<compile_context>
chip_gen: v6e
topology: v6e:2x2x1
jax: 0.10.0
libtpu: 0.0.40
codegen_flags: <defaults>
</compile_context>

<pallas_src>
import jax
import jax.numpy as jnp
from jax.experimental import pallas as pl
from jax.experimental.pallas import tpu as pltpu

EXPERTS = 8
TOP_K = 2
N_HEADS = 8


# --------------------------------------------------------------------------
# Pallas kernel 1: causal attention core (one (batch, head) tile per step)
# --------------------------------------------------------------------------
def attention_kernel(q_ref, k_ref, v_ref, o_ref):
    q = q_ref[...]                                   # (T, hd) f32
    k = k_ref[...]
    v = v_ref[...]
    t, hd = q.shape
    s = jnp.dot(q, k.T, preferred_element_type=jnp.float32) * (hd ** -0.5)
    row = jax.lax.broadcasted_iota(jnp.int32, (t, t), 0)
    col = jax.lax.broadcasted_iota(jnp.int32, (t, t), 1)
    s = jnp.where(col <= row, s, -1e30)              # causal mask
    s = s - jnp.max(s, axis=-1, keepdims=True)
    p = jnp.exp(s)
    p = p / jnp.sum(p, axis=-1, keepdims=True)
    o_ref[...] = jnp.dot(p, v, preferred_element_type=jnp.float32).astype(o_ref.dtype)


def attention_pallas(q, k, v):
    """q, k, v: (B, n_heads, T, hd) -> (B, n_heads, T, hd)."""
    B, nh, T, hd = q.shape
    spec = pl.BlockSpec((None, None, T, hd), lambda b, h: (b, h, 0, 0))
    return pl.pallas_call(
        attention_kernel,
        out_shape=jax.ShapeDtypeStruct((B, nh, T, hd), q.dtype),
        grid_spec=pltpu.PrefetchScalarGridSpec(
            num_scalar_prefetch=0,
            grid=(B, nh),
            in_specs=[spec, spec, spec],
            out_specs=spec,
        ),
        compiler_params=pltpu.CompilerParams(
            dimension_semantics=("parallel", "parallel")),
    )(q, k, v)


# --------------------------------------------------------------------------
# Pallas kernel 2: MoE SWiGLU experts
# grid = (token_blocks, experts, hidden_tiles); output block is resident across
# the two reduction axes and used directly as the f32 accumulator.
# --------------------------------------------------------------------------
def moe_expert_kernel(emask_ref, x_ref, w12_ref, w3_ref, cw_ref, o_ref):
    i = pl.program_id(0)   # token block
    e = pl.program_id(1)   # expert
    h = pl.program_id(2)   # hidden tile

    @pl.when((e == 0) & (h == 0))
    def _init():
        o_ref[...] = jnp.zeros_like(o_ref)

    # Skip experts that receive zero combine weight in this token block (top-2-of-8).
    @pl.when(emask_ref[i, e] != 0)
    def _compute():
        th = w3_ref.shape[0]
        # bf16 MXU matmul, f32 accumulate: x (tn, D) @ [W1|W2] h-tile (D, 2*th)
        y12 = jnp.dot(x_ref[...], w12_ref[...],
                      preferred_element_type=jnp.float32)        # (tn, 2*th) f32
        y1 = y12[:, :th]
        y2 = y12[:, th:]
        gated = (y1 * jax.nn.sigmoid(y1)) * y2                   # SwiGLU, f32 elementwise
        eo = jnp.dot(gated.astype(w3_ref.dtype), w3_ref[...],
                     preferred_element_type=jnp.float32)         # (tn, D) f32
        # Select column e of the lane-resident (tn, E) combine tile.
        cw = cw_ref[...]
        sel = jax.lax.broadcasted_iota(jnp.int32, cw.shape, 1) == e
        w = jnp.sum(jnp.where(sel, cw, 0.0), axis=1, keepdims=True)   # (tn, 1)
        o_ref[...] += eo * w


def moe_experts_pallas(x_flat, w1, w2, w3, combine, *, token_tile=None, hidden_tile=None):
    """x_flat: (N, D) f32; w1/w2: (E, D, H); w3: (E, H, D); combine: (N, E) f32."""
    N, D = x_flat.shape
    E, _, H = w1.shape

    # Tile sizing: keep token blocks reasonably large (MXU-bound) but != N by
    # default so the parallel axis has extent > 1 at production N.
    tn = token_tile or min(N, 512)
    if N % tn:
        tn = N
    th = hidden_tile or min(H, 1024)
    if H % th:
        th = H
    nblk, Hb = N // tn, H // th

    # bf16 streams (halve HBM traffic; MXU runs at bf16 peak), f32 accumulate in-kernel.
    wdt = jnp.bfloat16
    x_b = x_flat.astype(wdt)
    # Fuse W1|W2 per hidden tile: (E, Hb, D, 2*th); re-tile W3 rows: (E, Hb, th, D).
    w1_t = w1.reshape(E, D, Hb, th).transpose(0, 2, 1, 3)
    w2_t = w2.reshape(E, D, Hb, th).transpose(0, 2, 1, 3)
    w12 = jnp.concatenate([w1_t, w2_t], axis=-1).astype(wdt)     # (E, Hb, D, 2*th)
    w3r = w3.reshape(E, Hb, th, D).astype(wdt)                   # (E, Hb, th, D)
    cw = combine.astype(jnp.float32)                             # (N, E)

    # Per-(token block, expert) activity mask (scalar-prefetched into SMEM).
    emask = (cw.reshape(nblk, tn, E) > 0).any(axis=1).astype(jnp.int32)   # (nblk, E)

    # VMEM budget: double-buffered inputs + resident f32 output block.
    tile_bytes = 2 * (tn * D * 2 + D * (2 * th) * 2 + th * D * 2 + tn * E * 4) + tn * D * 4
    vmem_limit = None
    if tile_bytes > 12 * 1024 * 1024:
        vmem_limit = min(2 * tile_bytes, 100 * 1024 * 1024)

    cost = pl.CostEstimate(
        flops=6 * N * E * D * H,                      # dense upper bound (2 matmuls / visit)
        transcendentals=N * E * H,                    # sigmoid
        bytes_accessed=int(nblk * E * 3 * D * H * 2 + N * D * (2 + 4) + N * E * 4),
    )

    out = pl.pallas_call(
        moe_expert_kernel,
        out_shape=jax.ShapeDtypeStruct((N, D), jnp.float32),
        grid_spec=pltpu.PrefetchScalarGridSpec(
            num_scalar_prefetch=1,
            grid=(nblk, E, Hb),
            in_specs=[
                pl.BlockSpec((tn, D), lambda i, e, h, m: (i, 0)),               # x tile
                pl.BlockSpec((None, None, D, 2 * th), lambda i, e, h, m: (e, h, 0, 0)),  # [W1|W2]
                pl.BlockSpec((None, None, th, D), lambda i, e, h, m: (e, h, 0, 0)),      # W3
                pl.BlockSpec((tn, E), lambda i, e, h, m: (i, 0)),               # combine
            ],
            out_specs=pl.BlockSpec((tn, D), lambda i, e, h, m: (i, 0)),
        ),
        compiler_params=pltpu.CompilerParams(
            dimension_semantics=("parallel", "arbitrary", "arbitrary"),
            vmem_limit_bytes=vmem_limit),
        cost_estimate=cost,
    )(emask, x_b, w12, w3r, cw)
    return out


# --------------------------------------------------------------------------
# JAX glue: LayerNorm, MHA wrapper, router gating, full decoder block
# --------------------------------------------------------------------------
def layer_norm(x, gamma, beta, eps=1e-5):
    mu = jnp.mean(x, axis=-1, keepdims=True)
    var = jnp.mean((x - mu) ** 2, axis=-1, keepdims=True)
    return (x - mu) * jax.lax.rsqrt(var + eps) * gamma + beta


def mha_forward(params, x):
    B, T, D = x.shape
    q = jnp.einsum('btd,hde->bhte', x, params["wq"])
    k = jnp.einsum('btd,hde->bhte', x, params["wk"])
    v = jnp.einsum('btd,hde->bhte', x, params["wv"])
    attn = attention_pallas(q, k, v)                       # (B, nh, T, hd)
    concat = attn.transpose(0, 2, 1, 3).reshape(B, T, D)
    # TODO(synk): attention / output dropout (p=0.1) omitted — eval-mode identity.
    return concat @ params["wo"]


def moe_layer_forward(params, x, noise_key):
    B, T, D = x.shape
    E, K = EXPERTS, TOP_K
    gate_out = x @ params["gate_w"].T + params["gate_b"]           # (B, T, E)
    noise_lin = x @ params["noise_w"].T + params["noise_b"]        # (B, T, E)
    gnoise = jax.random.normal(noise_key, gate_out.shape, dtype=gate_out.dtype)
    noisy_router = jax.nn.softplus(noise_lin) * gnoise + gate_out
    top_v, top_i = jax.lax.top_k(noisy_router, K)
    probs = jax.nn.softmax(top_v, axis=-1)
    # dense combine weight (exactly equivalent to the top-k gather in the spec)
    combine = jnp.sum(jax.nn.one_hot(top_i, E, dtype=jnp.float32) * probs[..., None],
                      axis=-2)                                     # (B, T, E)
    out_flat = moe_experts_pallas(
        x.reshape(B * T, D), params["w1"], params["w2"], params["w3"],
        combine.reshape(B * T, E))
    return out_flat.reshape(B, T, D).astype(x.dtype)


def decoder_block_forward(params, x, noise_key):
    h1 = layer_norm(x, params["ln1_g"], params["ln1_b"])
    x = x + mha_forward(params, h1)
    h2 = layer_norm(x, params["ln2_g"], params["ln2_b"])
    x = x + moe_layer_forward(params, h2, noise_key)
    return x


def init_params(key, D):
    H = 2 * D
    hd = D // N_HEADS
    ks = jax.random.split(key, 11)
    s = 0.02
    return {
        "ln1_g": jnp.ones((D,), jnp.float32), "ln1_b": jnp.zeros((D,), jnp.float32),
        "ln2_g": jnp.ones((D,), jnp.float32), "ln2_b": jnp.zeros((D,), jnp.float32),
        "wq": s * jax.random.normal(ks[0], (N_HEADS, D, hd), jnp.float32),
        "wk": s * jax.random.normal(ks[1], (N_HEADS, D, hd), jnp.float32),
        "wv": s * jax.random.normal(ks[2], (N_HEADS, D, hd), jnp.float32),
        "wo": s * jax.random.normal(ks[3], (D, D), jnp.float32),
        "gate_w": s * jax.random.normal(ks[4], (EXPERTS, D), jnp.float32),
        "gate_b": s * jax.random.normal(ks[5], (EXPERTS,), jnp.float32),
        "noise_w": s * jax.random.normal(ks[6], (EXPERTS, D), jnp.float32),
        "noise_b": s * jax.random.normal(ks[7], (EXPERTS,), jnp.float32),
        # nn.Linear weights stored pre-transposed: W1/W2: (D, 2D), W3: (2D, D)
        "w1": 0.05 * jax.random.normal(ks[8], (EXPERTS, D, H), jnp.float32),
        "w2": 0.05 * jax.random.normal(ks[9], (EXPERTS, D, H), jnp.float32),
        "w3": 0.05 * jax.random.normal(ks[10], (EXPERTS, H, D), jnp.float32),
    }


# --------------------------------------------------------------------------
# Pure-JAX reference (same routing noise; mirrors the kernel's bf16 streams)
# --------------------------------------------------------------------------
def decoder_block_reference(params, x, noise_key):
    B, T, D = x.shape
    hd = D // N_HEADS
    h1 = layer_norm(x, params["ln1_g"], params["ln1_b"])
    q = jnp.einsum('btd,hde->bhte', h1, params["wq"])
    k = jnp.einsum('btd,hde->bhte', h1, params["wk"])
    v = jnp.einsum('btd,hde->bhte', h1, params["wv"])
    s = jnp.einsum('bhqe,bhke->bhqk', q, k) * (hd ** -0.5)
    mask = jnp.tril(jnp.ones((T, T), dtype=bool))
    s = jnp.where(mask, s, -jnp.inf)
    p = jax.nn.softmax(s, axis=-1)
    attn = jnp.einsum('bhqk,bhke->bhqe', p, v)
    x = x + attn.transpose(0, 2, 1, 3).reshape(B, T, D) @ params["wo"]

    h2 = layer_norm(x, params["ln2_g"], params["ln2_b"])
    gate_out = h2 @ params["gate_w"].T + params["gate_b"]
    noise_lin = h2 @ params["noise_w"].T + params["noise_b"]
    gnoise = jax.random.normal(noise_key, gate_out.shape, dtype=gate_out.dtype)
    noisy_router = jax.nn.softplus(noise_lin) * gnoise + gate_out
    top_v, top_i = jax.lax.top_k(noisy_router, TOP_K)
    probs = jax.nn.softmax(top_v, axis=-1)

    xf = h2.reshape(B * T, D).astype(jnp.bfloat16)

    def expert(e):
        w1 = params["w1"][e].astype(jnp.bfloat16)
        w2 = params["w2"][e].astype(jnp.bfloat16)
        w3 = params["w3"][e].astype(jnp.bfloat16)
        y1 = jnp.dot(xf, w1, preferred_element_type=jnp.float32)
        y2 = jnp.dot(xf, w2, preferred_element_type=jnp.float32)
        g = (y1 * jax.nn.sigmoid(y1)) * y2
        return jnp.dot(g.astype(jnp.bfloat16), w3, preferred_element_type=jnp.float32)

    all_out = jnp.stack([expert(e) for e in range(EXPERTS)], axis=1)      # (N, E, D)
    all_out = all_out.reshape(B, T, EXPERTS, D)
    gathered = jnp.take_along_axis(all_out, top_i[..., None], axis=2)     # (B, T, K, D)
    moe = jnp.sum(gathered * probs[..., None], axis=2)
    return x + moe


if __name__ == "__main__":
    B, T, D = 2, 16, 128        # small shapes; D multiple of 128 keeps lanes dense
    key = jax.random.PRNGKey(0)
    pkey, xkey, nkey = jax.random.split(key, 3)

    params = init_params(pkey, D)
    x = jax.random.normal(xkey, (B, T, D), jnp.float32)

    fwd = jax.jit(decoder_block_forward)
    out = jax.block_until_ready(fwd(params, x, nkey))

    ref = decoder_block_reference(params, x, nkey)
    assert out.shape == (B, T, D)
    err = float(jnp.max(jnp.abs(out - ref)))
    assert jnp.allclose(out, ref, atol=2e-3, rtol=2e-3), f"mismatch vs reference, max|diff|={err}"

    print("KERNEL_OK")
</pallas_src>

<mosaic_0001>
module attributes {stable_mosaic.version = 11 : i64} {
  func.func @attention_kernel(%arg0: i32, %arg1: i32, %arg2: memref<1x1x16x16xf32, #tpu.memory_space<vmem>>, %arg3: memref<1x1x16x16xf32, #tpu.memory_space<vmem>>, %arg4: memref<1x1x16x16xf32, #tpu.memory_space<vmem>>, %arg5: memref<1x1x16x16xf32, #tpu.memory_space<vmem>>) attributes {dimension_semantics = [#tpu.dimension_semantics<parallel>, #tpu.dimension_semantics<parallel>], iteration_bounds = array<i64: 2, 8>, scalar_prefetch = 0 : i64, scratch_operands = 0 : i64, tpu.core_type = #tpu.core_type<tc>, window_params = [{transform_indices = @transform_0, window_bounds = array<i64: 1, 1, 16, 16>}, {transform_indices = @transform_1, window_bounds = array<i64: 1, 1, 16, 16>}, {transform_indices = @transform_2, window_bounds = array<i64: 1, 1, 16, 16>}, {transform_indices = @transform_3, window_bounds = array<i64: 1, 1, 16, 16>}]} {
    %c0 = arith.constant 0 : index
    %c0_0 = arith.constant 0 : index
    %c0_1 = arith.constant 0 : index
    %c0_2 = arith.constant 0 : index
    %0 = vector.load %arg2[%c0, %c0_0, %c0_1, %c0_2] : memref<1x1x16x16xf32, #tpu.memory_space<vmem>>, vector<1x1x16x16xf32>
    %1 = vector.shape_cast %0 : vector<1x1x16x16xf32> to vector<16x16xf32>
    %c0_3 = arith.constant 0 : index
    %c0_4 = arith.constant 0 : index
    %c0_5 = arith.constant 0 : index
    %c0_6 = arith.constant 0 : index
    %2 = vector.load %arg3[%c0_3, %c0_4, %c0_5, %c0_6] : memref<1x1x16x16xf32, #tpu.memory_space<vmem>>, vector<1x1x16x16xf32>
    %3 = vector.shape_cast %2 : vector<1x1x16x16xf32> to vector<16x16xf32>
    %c0_7 = arith.constant 0 : index
    %c0_8 = arith.constant 0 : index
    %c0_9 = arith.constant 0 : index
    %c0_10 = arith.constant 0 : index
    %4 = vector.load %arg4[%c0_7, %c0_8, %c0_9, %c0_10] : memref<1x1x16x16xf32, #tpu.memory_space<vmem>>, vector<1x1x16x16xf32>
    %5 = vector.shape_cast %4 : vector<1x1x16x16xf32> to vector<16x16xf32>
    %6 = tpu.transpose %3, [1, 0] : vector<16x16xf32> -> vector<16x16xf32>
    %cst = arith.constant dense<0.000000e+00> : vector<16x16xf32>
    %7 = tpu.matmul %1, %6, %cst {dimension_numbers = #tpu.dot_dimension_numbers<[1], [0], [0], [1], [0, 0, 1, 1], [], []>} : vector<16x16xf32>, vector<16x16xf32>, vector<16x16xf32> -> vector<16x16xf32>
    %cst_11 = arith.constant 2.500000e-01 : f32
    %8 = vector.broadcast %cst_11 : f32 to vector<16x16xf32>
    %9 = arith.mulf %7, %8 : vector<16x16xf32>
    %10 = tpu.iota {dimensions = array<i32: 0>} : vector<16x16xi32>
    %11 = tpu.iota {dimensions = array<i32: 1>} : vector<16x16xi32>
    %12 = arith.cmpi sle, %11, %10 : vector<16x16xi32>
    %cst_12 = arith.constant -1.000000e+30 : f32
    %13 = vector.broadcast %cst_12 : f32 to vector<16x16xf32>
    %14 = arith.select %12, %9, %13 : vector<16x16xi1>, vector<16x16xf32>
    %cst_13 = arith.constant dense<0xFF800000> : vector<16xf32>
    %15 = vector.multi_reduction <maximumf>, %14, %cst_13 [1] : vector<16x16xf32> to vector<16xf32>
    %16 = vector.shape_cast %15 : vector<16xf32> to vector<16x1xf32>
    %17 = vector.broadcast %16 : vector<16x1xf32> to vector<16x16xf32>
    %18 = arith.subf %14, %17 : vector<16x16xf32>
    %19 = math.exp %18 : vector<16x16xf32>
    %cst_14 = arith.constant dense<0.000000e+00> : vector<16xf32>
    %20 = vector.multi_reduction <add>, %19, %cst_14 [1] : vector<16x16xf32> to vector<16xf32>
    %21 = vector.shape_cast %20 : vector<16xf32> to vector<16x1xf32>
    %22 = vector.broadcast %21 : vector<16x1xf32> to vector<16x16xf32>
    %23 = arith.divf %19, %22 : vector<16x16xf32>
    %cst_15 = arith.constant dense<0.000000e+00> : vector<16x16xf32>
    %24 = tpu.matmul %23, %5, %cst_15 {dimension_numbers = #tpu.dot_dimension_numbers<[1], [0], [0], [1], [0, 0, 1, 1], [], []>} : vector<16x16xf32>, vector<16x16xf32>, vector<16x16xf32> -> vector<16x16xf32>
    %c0_16 = arith.constant 0 : index
    %c0_17 = arith.constant 0 : index
    %c0_18 = arith.constant 0 : index
    %c0_19 = arith.constant 0 : index
    %25 = vector.load %arg5[%c0_16, %c0_17, %c0_18, %c0_19] : memref<1x1x16x16xf32, #tpu.memory_space<vmem>>, vector<1x1x16x16xf32>
    %26 = vector.shape_cast %25 : vector<1x1x16x16xf32> to vector<16x16xf32>
    %27 = vector.shape_cast %24 : vector<16x16xf32> to vector<1x1x16x16xf32>
    tpu.vector_store %arg5[%c0_16, %c0_17, %c0_18, %c0_19], %27 {strides = array<i32>} : memref<1x1x16x16xf32, #tpu.memory_space<vmem>>, vector<1x1x16x16xf32>,
    return
  }
  func.func @transform_0(%arg0: i32, %arg1: i32) -> (i32, i32, i32, i32) {
    %c0_i32 = arith.constant 0 : i32
    %c0_i32_0 = arith.constant 0 : i32
    %c0_i32_1 = arith.constant 0 : i32
    return %arg0, %arg1, %c0_i32, %c0_i32_0 : i32, i32, i32, i32
  }
  func.func @transform_1(%arg0: i32, %arg1: i32) -> (i32, i32, i32, i32) {
    %c0_i32 = arith.constant 0 : i32
    %c0_i32_0 = arith.constant 0 : i32
    %c0_i32_1 = arith.constant 0 : i32
    return %arg0, %arg1, %c0_i32, %c0_i32_0 : i32, i32, i32, i32
  }
  func.func @transform_2(%arg0: i32, %arg1: i32) -> (i32, i32, i32, i32) {
    %c0_i32 = arith.constant 0 : i32
    %c0_i32_0 = arith.constant 0 : i32
    %c0_i32_1 = arith.constant 0 : i32
    return %arg0, %arg1, %c0_i32, %c0_i32_0 : i32, i32, i32, i32
  }
  func.func @transform_3(%arg0: i32, %arg1: i32) -> (i32, i32, i32, i32) {
    %c0_i32 = arith.constant 0 : i32
    %c0_i32_0 = arith.constant 0 : i32
    %c0_i32_1 = arith.constant 0 : i32
    return %arg0, %arg1, %c0_i32, %c0_i32_0 : i32, i32, i32, i32
  }
}

module attributes {stable_mosaic.version = 11 : i64} {
  func.func @moe_expert_kernel(%arg0: i32, %arg1: i32, %arg2: i32, %arg3: memref<1x8xi32, #tpu.memory_space<smem>>, %arg4: memref<32x128xbf16, #tpu.memory_space<vmem>>, %arg5: memref<1x1x128x512xbf16, #tpu.memory_space<vmem>>, %arg6: memref<1x1x256x128xbf16, #tpu.memory_space<vmem>>, %arg7: memref<32x8xf32, #tpu.memory_space<vmem>>, %arg8: memref<32x128xf32, #tpu.memory_space<vmem>>) attributes {dimension_semantics = [#tpu.dimension_semantics<parallel>, #tpu.dimension_semantics<arbitrary>, #tpu.dimension_semantics<arbitrary>], iteration_bounds = array<i64: 1, 8, 1>, scalar_prefetch = 1 : i64, scratch_operands = 0 : i64, tpu.core_type = #tpu.core_type<tc>, window_params = [{transform_indices = @transform_0, window_bounds = array<i64: 32, 128>}, {transform_indices = @transform_1, window_bounds = array<i64: 1, 1, 128, 512>}, {transform_indices = @transform_2, window_bounds = array<i64: 1, 1, 256, 128>}, {transform_indices = @transform_3, window_bounds = array<i64: 32, 8>}, {transform_indices = @transform_4, window_bounds = array<i64: 32, 128>}]} {
    %c0_i32 = arith.constant 0 : i32
    %0 = arith.cmpi eq, %arg1, %c0_i32 : i32
    %c0_i32_0 = arith.constant 0 : i32
    %1 = arith.cmpi eq, %arg2, %c0_i32_0 : i32
    %2 = arith.andi %0, %1 : i1
    %3 = arith.extui %2 : i1 to i32
    %c0_i32_1 = arith.constant 0 : i32
    %4 = arith.cmpi ne, %3, %c0_i32_1 : i32
    scf.if %4 {
      %cst = arith.constant 0.000000e+00 : f32
      %11 = vector.broadcast %cst : f32 to vector<32x128xf32>
      %c0 = arith.constant 0 : index
      %c0_4 = arith.constant 0 : index
      %12 = vector.load %arg8[%c0, %c0_4] : memref<32x128xf32, #tpu.memory_space<vmem>>, vector<32x128xf32>
      tpu.vector_store %arg8[%c0, %c0_4], %11 {strides = array<i32>} : memref<32x128xf32, #tpu.memory_space<vmem>>, vector<32x128xf32>,
    } else {
    }
    %5 = arith.index_cast %arg0 : i32 to index
    %6 = arith.index_cast %arg1 : i32 to index
    %7 = memref.load %arg3[%5, %6] : memref<1x8xi32, #tpu.memory_space<smem>>
    %c0_i32_2 = arith.constant 0 : i32
    %8 = arith.cmpi ne, %7, %c0_i32_2 : i32
    %9 = arith.extui %8 : i1 to i32
    %c0_i32_3 = arith.constant 0 : i32
    %10 = arith.cmpi ne, %9, %c0_i32_3 : i32
    scf.if %10 {
      %c0 = arith.constant 0 : index
      %c0_4 = arith.constant 0 : index
      %11 = vector.load %arg4[%c0, %c0_4] : memref<32x128xbf16, #tpu.memory_space<vmem>>, vector<32x128xbf16>
      %c0_5 = arith.constant 0 : index
      %c0_6 = arith.constant 0 : index
      %c0_7 = arith.constant 0 : index
      %c0_8 = arith.constant 0 : index
      %12 = vector.load %arg5[%c0_5, %c0_6, %c0_7, %c0_8] : memref<1x1x128x512xbf16, #tpu.memory_space<vmem>>, vector<1x1x128x512xbf16>
      %13 = vector.shape_cast %12 : vector<1x1x128x512xbf16> to vector<128x512xbf16>
      %cst = arith.constant dense<0.000000e+00> : vector<32x512xf32>
      %14 = tpu.matmul %11, %13, %cst {dimension_numbers = #tpu.dot_dimension_numbers<[1], [0], [0], [1], [0, 0, 1, 1], [], []>} : vector<32x128xbf16>, vector<128x512xbf16>, vector<32x512xf32> -> vector<32x512xf32>
      %15 = vector.extract_strided_slice %14 {offsets = [0, 0], sizes = [32, 256], strides = [1, 1]} : vector<32x512xf32> to vector<32x256xf32>
      %16 = vector.extract_strided_slice %14 {offsets = [0, 256], sizes = [32, 256], strides = [1, 1]} : vector<32x512xf32> to vector<32x256xf32>
      %17 = arith.negf %15 : vector<32x256xf32>
      %18 = math.exp %17 : vector<32x256xf32>
      %cst_9 = arith.constant 1.000000e+00 : f32
      %19 = vector.broadcast %cst_9 : f32 to vector<32x256xf32>
      %20 = arith.addf %19, %18 : vector<32x256xf32>
      %21 = arith.divf %19, %20 : vector<32x256xf32>
      %22 = arith.mulf %15, %21 : vector<32x256xf32>
      %23 = arith.mulf %22, %16 : vector<32x256xf32>
      %24 = arith.truncf %23 : vector<32x256xf32> to vector<32x256xbf16>
      %c0_10 = arith.constant 0 : index
      %c0_11 = arith.constant 0 : index
      %c0_12 = arith.constant 0 : index
      %c0_13 = arith.constant 0 : index
      %25 = vector.load %arg6[%c0_10, %c0_11, %c0_12, %c0_13] : memref<1x1x256x128xbf16, #tpu.memory_space<vmem>>, vector<1x1x256x128xbf16>
      %26 = vector.shape_cast %25 : vector<1x1x256x128xbf16> to vector<256x128xbf16>
      %cst_14 = arith.constant dense<0.000000e+00> : vector<32x128xf32>
      %27 = tpu.matmul %24, %26, %cst_14 {dimension_numbers = #tpu.dot_dimension_numbers<[1], [0], [0], [1], [0, 0, 1, 1], [], []>} : vector<32x256xbf16>, vector<256x128xbf16>, vector<32x128xf32> -> vector<32x128xf32>
      %c0_15 = arith.constant 0 : index
      %c0_16 = arith.constant 0 : index
      %28 = vector.load %arg7[%c0_15, %c0_16] : memref<32x8xf32, #tpu.memory_space<vmem>>, vector<32x8xf32>
      %29 = tpu.iota {dimensions = array<i32: 1>} : vector<32x8xi32>
      %30 = vector.broadcast %arg1 : i32 to vector<32x8xi32>
      %31 = arith.cmpi eq, %29, %30 : vector<32x8xi32>
      %cst_17 = arith.constant 0.000000e+00 : f32
      %32 = vector.broadcast %cst_17 : f32 to vector<32x8xf32>
      %33 = arith.select %31, %28, %32 : vector<32x8xi1>, vector<32x8xf32>
      %cst_18 = arith.constant dense<0.000000e+00> : vector<32xf32>
      %34 = vector.multi_reduction <add>, %33, %cst_18 [1] : vector<32x8xf32> to vector<32xf32>
      %35 = vector.shape_cast %34 : vector<32xf32> to vector<32x1xf32>
      %c0_19 = arith.constant 0 : index
      %c0_20 = arith.constant 0 : index
      %36 = vector.load %arg8[%c0_19, %c0_20] : memref<32x128xf32, #tpu.memory_space<vmem>>, vector<32x128xf32>
      %37 = vector.broadcast %35 : vector<32x1xf32> to vector<32x128xf32>
      %38 = arith.mulf %27, %37 : vector<32x128xf32>
      %39 = arith.addf %36, %38 : vector<32x128xf32>
      %c0_21 = arith.constant 0 : index
      %c0_22 = arith.constant 0 : index
      %40 = vector.load %arg8[%c0_21, %c0_22] : memref<32x128xf32, #tpu.memory_space<vmem>>, vector<32x128xf32>
      tpu.vector_store %arg8[%c0_21, %c0_22], %39 {strides = array<i32>} : memref<32x128xf32, #tpu.memory_space<vmem>>, vector<32x128xf32>,
    } else {
    }
    return
  }
  func.func @transform_0(%arg0: i32, %arg1: i32, %arg2: i32, %arg3: memref<1x8xi32, #tpu.memory_space<smem>>) -> (i32, i32) {
    %c0_i32 = arith.constant 0 : i32
    %c0_i32_0 = arith.constant 0 : i32
    return %arg0, %c0_i32 : i32, i32
  }
  func.func @transform_1(%arg0: i32, %arg1: i32, %arg2: i32, %arg3: memref<1x8xi32, #tpu.memory_space<smem>>) -> (i32, i32, i32, i32) {
    %c0_i32 = arith.constant 0 : i32
    %c0_i32_0 = arith.constant 0 : i32
    %c0_i32_1 = arith.constant 0 : i32
    return %arg1, %arg2, %c0_i32, %c0_i32_0 : i32, i32, i32, i32
  }
  func.func @transform_2(%arg0: i32, %arg1: i32, %arg2: i32, %arg3: memref<1x8xi32, #tpu.memory_space<smem>>) -> (i32, i32, i32, i32) {
    %c0_i32 = arith.constant 0 : i32
    %c0_i32_0 = arith.constant 0 : i32
    %c0_i32_1 = arith.constant 0 : i32
    return %arg1, %arg2, %c0_i32, %c0_i32_0 : i32, i32, i32, i32
  }
  func.func @transform_3(%arg0: i32, %arg1: i32, %arg2: i32, %arg3: memref<1x8xi32, #tpu.memory_space<smem>>) -> (i32, i32) {
    %c0_i32 = arith.constant 0 : i32
    %c0_i32_0 = arith.constant 0 : i32
    return %arg0, %c0_i32 : i32, i32
  }
  func.func @transform_4(%arg0: i32, %arg1: i32, %arg2: i32, %arg3: memref<1x8xi32, #tpu.memory_space<smem>>) -> (i32, i32) {
    %c0_i32 = arith.constant 0 : i32
    %c0_i32_0 = arith.constant 0 : i32
    return %arg0, %c0_i32 : i32, i32
  }
}

</mosaic_0001>

<bundles_post_ra>
// kernel: decoder_block_forward.2
= control target key start
LH: loop header
LB: loop body
LE: loop exit
PB: predicated region body
PF: predicated region fallthrough
CT: control target
= control target key end

     0   :  { %s777_s12 = smov 0   ;;  %s779_s13 = smov 0   ;;  %s854_s0 = inlined_call_operand.vmem [shape: f32[2,8,16,16], index: 0, kind: input, shape index: {}]   ;;  %s855_s1 = inlined_call_operand.vmem [shape: f32[2,8,16,16], index: 1, kind: input, shape index: {}]   ;;  %s856_s2 = inlined_call_operand.vmem [shape: f32[2,8,16,16], index: 2, kind: input, shape index: {}]   ;;  %s857_s3 = inlined_call_operand.vmem [shape: f32[2,8,16,16], index: 3, kind: output, shape index: {}]  }
   0x1   :  { %s781_s14 = smov 0   ;;  %s783_s15 = smov 0  }
   0x2   :  { %s785_s16 = smov 0  }
   0x3 LB: > { %s22_s17 = sadd.s32 1, %s747_s14  ;;  %s25_s18 = sadd.s32 1, %s751_s15  ;;  %s755_s16 = sphi %s785_s16, %s13_s16   ;;  %s751_s15 = sphi %s783_s15, %s861_s15   ;;  %s747_s14 = sphi %s781_s14, %s860_s14   ;;  %s743_s13 = sphi %s779_s13, %s859_s13   ;;  %s739_s12 = sphi %s777_s12, %s858_s12  }
   0x4   : > { %p23_p0 = scmp.ge.s32.totalorder %s22_s17, 8  ;;  %p626_p1 = scmp.ge.s32.totalorder %s755_s16, 1 }
   0x5   : > { %p189_p2 = scmp.lt.s32.totalorder %s755_s16, 17 }
   0x6   : > { %s863_s17 = smov (%p23_p0, %s22_s17), 0  ;;  %s865_s18 = smov (!%p23_p0, %s25_s18), %s751_s15 }
   0x7   : > { %p190_p3 = pnand %p626_p1, %p189_p2  ;;  %p27_p4 = scmp.ge.s32.totalorder %s865_s18, 2 }
   0x8   : > { %p239_p5 = scmp.lt.s32.totalorder (!%p190_p3), %s743_s13, 1  ;;  %p241_p6 = scmp.lt.s32.totalorder (!%p190_p3), %s739_s12, 7 }
   0x9   : > { %s867_s18 = smov (%p27_p4, %s865_s18), 0  ;;  %193 = sbr.rel (%p190_p3) target bundleno = 738 (0x2e2), region = 32 }
   0xe   : > { %s869_s13 = smov (!%p239_p5, %s743_s13), 1  ;;  %s871_s12 = smov (!%p241_p6, %s739_s12), 7  ;;  %vm281_vm0 = vcmask 130048   ;;  %v371_v4 = vlaneseq }
   0xf   : > { %s628_s19 = sshll.u32 %s869_s13, 4  ;;  %s627_s20 = sshll.u32 %s871_s12, 1 }
  0x10   : > { %s245_s21 = sadd.s32 %s628_s19, %s627_s20  ;;  %v372_v5 = vshrl.u32 %v371_v4, 7  ;;  %v375_v7 = vand.u32 127, %v371_v4 }
  0x11   : > { %s807_s22 = sshll.u32 %s245_s21, 3 }
  0x12   : > { %s256_s25 = scalar_lea.vmem %s855_s1, %s807_s22  ;;  %s247_s28 = scalar_lea.vmem %s854_s0, %s807_s22  ;;  %v373_v8 = vadd.s32 8, %v372_v5  ;;  %vm376_vm1 = vcmp.le.s32.totalorder %v375_v7, %v372_v5 }
  0x13   : > { %v277_v0 = vld [vmem:[%s256_s25] sm:$0xff]  ;;  %v278_v1 = vld [vmem:[%s256_s25 + $0x8] sm:$0xff]  ;;  %s265_s4 = scalar_lea.vmem %s856_s2, %s807_s22  ;;  %s274_s7 = scalar_lea.vmem %s857_s3, %s807_s22 }
  0x14   : > { %v275_v2 = vld [vmem:[%s247_s28] sm:$0xff]  ;;  %655 = vmatprep.subr.msk.mxu0 %vm281_vm0, %v278_v1  ;;  %v276_v3 = vld [vmem:[%s247_s28 + $0x8] sm:$0xff]  ;;  %vm377_vm2 = vcmp.le.s32.totalorder %v375_v7, %v373_v8 }
  0x15   : > { %659 = vmatprep.mubr.msk.f32.mxu0 %vm281_vm0, %v275_v2  ;;  %656 = vmatpush3.xpose.msk.msra.mxu0 %vm281_vm0, %v278_v1  ;;  %v280_v26 = vld [vmem:[%s265_s4 + $0x8] sm:$0xff]  ;;  %v279_v27 = vld [vmem:[%s265_s4] sm:$0xff] }
  0x16   : > { %657 = vmatprep.subr.msk.mxu0 %vm281_vm0, %v277_v0  ;;  %662 = vmatprep.subr.mxu1 %v280_v26 }
  0x17   : > { %663 = vmatpush3.msra.mxu1 %v280_v26 }
  0x18   : > { %664 = vmatprep.subr.mxu1 %v279_v27 }
  0x19   : > { %658 = vmatpush3.xpose.msk.msra.mxu0 %vm281_vm0, %v277_v0  ;;  %665 = vmatpush3.msra.mxu1 %v279_v27 }
  0x1c   : > { %660 = vmatmul.mubr.msk.f32.vlgmr.msra.gmra.mxu0 %vm281_vm0, %v276_v3 }
  0xdc   : > { %v661_v6 = vpop.f32.mrf.mxu0 }
  0xdd   : > { %v370_v10 = vmul.f32 0.25, %v661_v6 }
  0xde   : > { %v360_v9 = vpop.f32.mrf.mxu0 }
  0xdf   : > { %v369_v11 = vmul.f32 0.25, %v360_v9  ;;  %v379_v14 = vsel %vm377_vm2, %v370_v10, -1e+30 }
  0xe0   : > { %v383_v15 = vsel %vm281_vm0, %v379_v14, -inf }
  0xe1   : > { %v378_v12 = vsel %vm376_vm1, %v369_v11, -1e+30 }
  0xe2   : > { %v380_v13 = vsel %vm281_vm0, %v378_v12, -inf }
  0xe3   : > { %381 = vmax.xlane.f32.xlu0 %v380_v13 }
  0xe7   : > { %384 = vmax.xlane.f32.xlu0 %v383_v15 }
 0x16c   : > { %v382_v16 = vpop.xlane.xlu0 %381 }
 0x16d   : > { %v386_v17 = vsub.f32 %v378_v12, %v382_v16 }
 0x16f   : > { %v388_v18 = vmul.f32 1.442695, %v386_v17 }
 0x170   : > { %v385_v19 = vpop.xlane.xlu0 %384 }
 0x171   : > { %709 = vpow2.f32 %v388_v18  ;;  %v387_v20 = vsub.f32 %v379_v14, %v385_v19 }
 0x173   : > { %v390_v21 = vmul.f32 1.442695, %v387_v20 }
 0x175   : > { %711 = vpow2.f32 %v390_v21 }
 0x17e   : > { %v710_v22 = vpop.eup %709 }
 0x17f   : > { %v392_v23 = vsel %vm281_vm0, %v710_v22, 0.0 }
 0x180   : > { %393 = vadd.xlane.f32.xlu1 %v392_v23 }
 0x182   : > { %v712_v24 = vpop.eup %711 }
 0x183   : > { %v395_v25 = vsel %vm281_vm0, %v712_v24, 0.0 }
 0x184   : > { %396 = vadd.xlane.f32.xlu1 %v395_v25 }
 0x209   : > { %v394_v28 = vpop.xlane.xlu1 %393 }
 0x20a   : > { %713 = vrcp.f32 %v394_v28 }
 0x20d   : > { %v397_v29 = vpop.xlane.xlu1 %396 }
 0x20e   : > { %715 = vrcp.f32 %v397_v29 }
 0x217   : > { %v714_v30 = vpop.eup %713 }
 0x218   : > { %v399_v31 = vmul.f32 %v714_v30, %v710_v22 }
 0x21a   : > { %666 = vmatprep.mubr.msk.f32.mxu1 %vm281_vm0, %v399_v31 }
 0x21b   : > { %v716_v32 = vpop.eup %715 }
 0x21c   : > { %v401_v33 = vmul.f32 %v716_v32, %v712_v24 }
 0x21e   : > { %667 = vmatmul.mubr.msk.f32.vlgmr.msra.gmra.mxu1 %vm281_vm0, %v401_v33 }
 0x2de   : > { %v668_v34 = vpop.f32.mrf.mxu1 }
 0x2df   : > { %484 = vst.msk [vmem:[%s274_s7 + $0x8] sm:$0xff] %vm281_vm0, %v668_v34 }
 0x2e0   : > { %v474_v35 = vpop.f32.mrf.mxu1 }
 0x2e1   : > { %483 = vst.msk [vmem:[%s274_s7] sm:$0xff] %vm281_vm0, %v474_v35 }
 0x2e2 PF: > { %s13_s16 = sadd.s32 1, %s755_s16   ;;  %s858_s12 = smov %s747_s14 }
 0x2e3   : > { %p10_p7 = scmp.ge.s32.totalorder %s13_s16, 18   ;;  %s859_s13 = smov %s751_s15 }
 0x2e4   : > { %s860_s14 = smov %s863_s17  ;;  %s861_s15 = smov %s867_s18 }
 0x2e5   :  { %12 = sbr.rel (!%p10_p7) target bundleno = 3 (0x3), region = 68 }

// kernel: decoder_block_forward.3
= control target key start
LH: loop header
LB: loop body
LE: loop exit
PB: predicated region body
PF: predicated region fallthrough
CT: control target
= control target key end

     0   :  { %s1541_s0 = inlined_call_operand.vmem [shape: s32[1,8], index: 0, kind: input, shape index: {}]   ;;  %s1542_s1 = inlined_call_operand.vmem [shape: bf16[32,128], index: 1, kind: input, shape index: {}]   ;;  %s1543_s2 = inlined_call_operand.vmem [shape: bf16[8,1,128,512], index: 2, kind: input, shape index: {}]   ;;  %s1544_s3 = inlined_call_operand.vmem [shape: bf16[8,1,256,128], index: 3, kind: input, shape index: {}]   ;;  %s1545_s4 = inlined_call_operand.vmem [shape: f32[32,8], index: 4, kind: input, shape index: {}]   ;;  %s1546_s5 = inlined_call_operand.vmem [shape: f32[32,128], index: 5, kind: output, shape index: {}]  }
   0x1   :  { %s10_s20 = sshll.u32 %s1541_s0, 4  ;;  %s11_s20 = int_to_ptr.vmem [resolvable:$true] %s10_s20 }
   0x2   :  { %s1312_s21 = scalar_lea.vmem %s11_s20, 16  ;;  %p1317_p1 = scmp.lt.s32.totalorder %s11_s20, %s11_s20 }
   0x3   :  { %p1313_p0 = scmp.ne.s32.totalorder %s11_s20, %s1312_s21  ;;  %p1318_p2 = scmp.lt.s32.totalorder %s1312_s21, %s1312_s21 }
   0x5   :  { %p1319_p3 = por %p1318_p2, %p1317_p1 }
   0x7   :  { %p1320_p4 = pnand %p1319_p3, %p1313_p0 }
   0x9   :  { %1323 = shalt.err (!%p1320_p4)  }
   0xa   :  { %s1350_s22 = smov [#allocation3]  }
   0xb   :  { %13 = dma.vmem_to_smem %s11_s20, 16, %s1350_s22, [#allocation2] }
   0xc   :  { %1336 = dma.done.wait [#allocation2], 16 }
   0xd   :  { %1337 = vsyncadd [#allocation2], 4294967280 }
   0xe   :  { %15 = sfence }
   0xf   :  { %s1386_s23 = smov 0   ;;  %s1388_s24 = smov 0  }
  0x10   :  { %s1390_s25 = smov 0  }
  0x11 LB: > { %s36_s0 = sadd.s32 1, %s1344_s24  ;;  %p1070_p5 = scmp.ge.s32.totalorder %s1348_s25, 1  ;;  %s1348_s25 = sphi %s1390_s25, %s21_s25   ;;  %s1344_s24 = sphi %s1388_s24, %s1548_s24   ;;  %s1340_s23 = sphi %s1386_s23, %s1547_s23  }
  0x12   : > { %p38_p6 = scmp.ge.s32.totalorder %s36_s0, 8  ;;  %p232_p7 = scmp.lt.s32.totalorder %s1348_s25, 9 }
  0x14   : > { %s1550_s0 = smov (%p38_p6, %s36_s0), 0  ;;  %p233_p8 = pnand %p1070_p5, %p232_p7 }
  0x15   : > { %p287_p9 = scmp.lt.s32.totalorder (!%p233_p8), %s1340_s23, 7  ;;  %p318_p10 = scmp.eq.s32.totalorder (!%p233_p8), %s1340_s23, 0 }
  0x16   : > { %236 = sbr.rel (%p233_p8) target bundleno = 535 (0x217), region = 36 }
  0x1b   : > { %s288_s26 = scalar_select %p287_p9, %s1340_s23, 7  ;;  %v1351_v0 = vmov (%p318_p10), 0.0  }
  0x1c   : > { %323 = sbr.rel (!%p318_p10) target bundleno = 33 (0x21), region = 40  ;;  %324 = vst [vmem:[%s1546_s5] sm:$0xff] (%p318_p10), %v1351_v0  ;;  %325 = vst [vmem:[%s1546_s5 + $0x8] sm:$0xff] (%p318_p10), %v1351_v0 }
  0x1d   : > { %s1140_s27 = sshll.u32 %s288_s26, 8  ;;  %s1141_s28 = sshll.u32 %s288_s26, 7  ;;  %326 = vst [vmem:[%s1546_s5 + $0x10] sm:$0xff] (%p318_p10), %v1351_v0  ;;  %327 = vst [vmem:[%s1546_s5 + $0x18] sm:$0xff] (%p318_p10), %v1351_v0 }
  0x1e   : > { %s1412_s6 = scalar_lea.vmem %s1543_s2, %s1140_s27  ;;  %s1417_s9 = scalar_lea.vmem %s1544_s3, %s1141_s28 }
  0x21 PF: > { %s328_s18 = sshra.s32 %s1340_s23, 7  ;;  %s333_s19 = sand.u32 127, %s1340_s23 }
  0x22   : > { %s1076_s20 = sshll.u32 %s328_s18, 7 }
  0x23   : > { %s334_s21 = sadd.s32 %s1076_s20, %s333_s19 }
  0x24   : > { %s335_s22 = sld [smem:[#allocation3 + %s334_s21]] }
  0x2a   : > { %p1077_p11 = scmp.eq.s32.totalorder %s335_s22, 0 }
  0x2c   : > { %339 = sbr.rel (%p1077_p11) target bundleno = 535 (0x217), region = 44 }
  0x31   : > { %v1214_v1 = vld [vmem:[%s1412_s6 + $0xe4] ss:$16 sps:$4 sm:$0xff]   ;;  %v1216_v2 = vld [vmem:[%s1412_s6 + $0xe0] ss:$16 sps:$4 sm:$0xff]   ;;  %v1352_v3 = vmov 0   ;;  %v1248_v34 = vld [vmem:[%s1542_s1 + $0x8] sm:$0xff]   ;;  %v903_v52 = vlaneseq  ;;  %v905_v54 = vstv %s1340_s23 }
  0x32   : > { %580 = vmatprep.mubr.bf16.mxu0 %v1352_v3  ;;  %633 = vmatprep.mubr.bf16.mxu1 %v1352_v3  ;;  %v1217_v4 = vld [vmem:[%s1412_s6 + $0xc4] ss:$16 sps:$4 sm:$0xff]   ;;  %v1219_v5 = vld [vmem:[%s1412_s6 + $0xc0] ss:$16 sps:$4 sm:$0xff]   ;;  %v1237_v10 = vld [vmem:[%s1412_s6 + $0xec] ss:$16 sps:$4 sm:$0xff]  }
  0x33   : > { %548 = vmatprep.subr.bf16.mxu0 %v1214_v1  ;;  %v1220_v6 = vld [vmem:[%s1412_s6 + $0xa4] ss:$16 sps:$4 sm:$0xff]   ;;  %v1222_v7 = vld [vmem:[%s1412_s6 + $0xa0] ss:$16 sps:$4 sm:$0xff]   ;;  %v1240_v11 = vld [vmem:[%s1412_s6 + $0xe8] ss:$16 sps:$4 sm:$0xff]   ;;  %601 = vmatprep.subr.bf16.mxu1 %v1237_v10 }
  0x34   : > { %549 = vmatpush1.bf16.msra.mxu0 %v1216_v2  ;;  %v1223_v8 = vld [vmem:[%s1412_s6 + $0x84] ss:$16 sps:$4 sm:$0xff]   ;;  %v1225_v9 = vld [vmem:[%s1412_s6 + $0x80] ss:$16 sps:$4 sm:$0xff]   ;;  %v1242_v13 = vld [vmem:[%s1412_s6 + $0xcc] ss:$16 sps:$4 sm:$0xff]   ;;  %602 = vmatpush1.bf16.msra.mxu1 %v1240_v11 }
  0x35   : > { %550 = vmatprep.subr.bf16.mxu0 %v1217_v4  ;;  %v1226_v12 = vld [vmem:[%s1412_s6 + $0x64] ss:$16 sps:$4 sm:$0xff]   ;;  %v1244_v14 = vld [vmem:[%s1412_s6 + $0xc8] ss:$16 sps:$4 sm:$0xff]   ;;  %v1228_v15 = vld [vmem:[%s1412_s6 + $0x60] ss:$16 sps:$4 sm:$0xff]   ;;  %603 = vmatprep.subr.bf16.mxu1 %v1242_v13 }
  0x36   : > { %v1245_v16 = vld [vmem:[%s1412_s6 + $0xac] ss:$16 sps:$4 sm:$0xff]   ;;  %v1229_v17 = vld [vmem:[%s1412_s6 + $0x44] ss:$16 sps:$4 sm:$0xff]   ;;  %v1231_v18 = vld [vmem:[%s1412_s6 + $0x40] ss:$16 sps:$4 sm:$0xff]  }
  0x37   : > { %v1247_v19 = vld [vmem:[%s1412_s6 + $0xa8] ss:$16 sps:$4 sm:$0xff]   ;;  %v1249_v20 = vld [vmem:[%s1412_s6 + $0x8c] ss:$16 sps:$4 sm:$0xff]   ;;  %v1232_v21 = vld [vmem:[%s1412_s6 + $0x24] ss:$16 sps:$4 sm:$0xff]  }
  0x38   : > { %551 = vmatpush1.bf16.msra.mxu0 %v1219_v5  ;;  %604 = vmatpush1.bf16.msra.mxu1 %v1244_v14  ;;  %v1234_v22 = vld [vmem:[%s1412_s6 + $0x20] ss:$16 sps:$4 sm:$0xff]   ;;  %v1235_v23 = vld [vmem:[%s1412_s6 + $0x4] ss:$16 sps:$4 sm:$0xff]   ;;  %v1251_v24 = vld [vmem:[%s1412_s6 + $0x88] ss:$16 sps:$4 sm:$0xff]  }
  0x39   : > { %552 = vmatprep.subr.bf16.mxu0 %v1220_v6  ;;  %605 = vmatprep.subr.bf16.mxu1 %v1245_v16  ;;  %v1252_v25 = vld [vmem:[%s1412_s6 + $0x6c] ss:$16 sps:$4 sm:$0xff]   ;;  %v1254_v26 = vld [vmem:[%s1412_s6 + $0x68] ss:$16 sps:$4 sm:$0xff]   ;;  %v1239_v27 = vld [vmem:[%s1412_s6] ss:$16 sps:$4 sm:$0xff]  }
  0x3a   : > { %v1255_v28 = vld [vmem:[%s1412_s6 + $0x4c] ss:$16 sps:$4 sm:$0xff]   ;;  %v1241_v29 = vld [vmem:[%s1542_s1] sm:$0xff]   ;;  %v1257_v30 = vld [vmem:[%s1412_s6 + $0x48] ss:$16 sps:$4 sm:$0xff]   ;;  %v904_v55 = vand.u32 127, %v903_v52 }
  0x3b   : > { %v1258_v31 = vld [vmem:[%s1412_s6 + $0x2c] ss:$16 sps:$4 sm:$0xff]   ;;  %v1260_v32 = vld [vmem:[%s1412_s6 + $0x28] ss:$16 sps:$4 sm:$0xff]   ;;  %v1266_v38 = vld [vmem:[%s1417_s9 + $0x70] sm:$0xff]   ;;  %vm911_vm0 = vcmask 64512  }
  0x3c   : > { %553 = vmatpush1.bf16.msra.mxu0 %v1222_v7  ;;  %606 = vmatpush1.bf16.msra.mxu1 %v1247_v19  ;;  %v1261_v33 = vld [vmem:[%s1412_s6 + $0xc] ss:$16 sps:$4 sm:$0xff]   ;;  %v1263_v35 = vld [vmem:[%s1412_s6 + $0x8] ss:$16 sps:$4 sm:$0xff]   ;;  %v1267_v39 = vld [vmem:[%s1417_s9 + $0x30] sm:$0xff]   ;;  %vm906_vm1 = vcmp.eq.s32.totalorder %v904_v55, %v905_v54 }
  0x3d   : > { %554 = vmatprep.subr.bf16.mxu0 %v1223_v8  ;;  %607 = vmatprep.subr.bf16.mxu1 %v1249_v20  ;;  %v1264_v36 = vld [vmem:[%s1417_s9 + $0x78] sm:$0xff]   ;;  %v1268_v40 = vld [vmem:[%s1417_s9 + $0x68] sm:$0xff]   ;;  %v1270_v42 = vld [vmem:[%s1417_s9 + $0x60] sm:$0xff]  }
  0x3e   : > { %v1265_v37 = vld [vmem:[%s1417_s9 + $0x38] sm:$0xff]   ;;  %v1269_v41 = vld [vmem:[%s1417_s9 + $0x28] sm:$0xff]   ;;  %v1271_v43 = vld [vmem:[%s1417_s9 + $0x20] sm:$0xff]  }
  0x3f   : > { %v1272_v44 = vld [vmem:[%s1417_s9 + $0x58] sm:$0xff]   ;;  %v1274_v46 = vld [vmem:[%s1417_s9 + $0x50] sm:$0xff]   ;;  %v1276_v48 = vld [vmem:[%s1417_s9 + $0x48] sm:$0xff]  }
  0x40   : > { %555 = vmatpush1.bf16.msra.mxu0 %v1225_v9  ;;  %608 = vmatpush1.bf16.msra.mxu1 %v1251_v24  ;;  %v1273_v45 = vld [vmem:[%s1417_s9 + $0x18] sm:$0xff]   ;;  %v1275_v47 = vld [vmem:[%s1417_s9 + $0x10] sm:$0xff]   ;;  %v1277_v49 = vld [vmem:[%s1417_s9 + $0x8] sm:$0xff]  }
  0x41   : > { %556 = vmatprep.subr.bf16.mxu0 %v1226_v12  ;;  %609 = vmatprep.subr.bf16.mxu1 %v1252_v25  ;;  %v1278_v50 = vld [vmem:[%s1417_s9 + $0x40] sm:$0xff]   ;;  %v900_v56 = vld [vmem:[%s1545_s4 + $0x8] sm:$0xff]  ;;  %v901_v57 = vld [vmem:[%s1545_s4 + $0x10] sm:$0xff] }
  0x42   : > { %v1279_v51 = vld [vmem:[%s1417_s9] sm:$0xff]   ;;  %v902_v58 = vld [vmem:[%s1545_s4 + $0x18] sm:$0xff]  ;;  %v908_v60 = vsel %vm906_vm1, %v900_v56, 0.0  ;;  %v909_v61 = vsel %vm906_vm1, %v901_v57, 0.0 }
  0x43   : > { %v899_v53 = vld [vmem:[%s1545_s4] sm:$0xff]  ;;  %v910_v62 = vsel %vm906_vm1, %v902_v58, 0.0  ;;  %v918_v0 = vsel %vm911_vm0, %v909_v61, 0.0  ;;  %v915_v1 = vsel %vm911_vm0, %v908_v60, 0.0 }
  0x44   : > { %557 = vmatpush1.bf16.msra.mxu0 %v1228_v15  ;;  %610 = vmatpush1.bf16.msra.mxu1 %v1254_v26  ;;  %v907_v59 = vsel %vm906_vm1, %v899_v53, 0.0  ;;  %v921_v2 = vsel %vm911_vm0, %v910_v62, 0.0 }
  0x45   : > { %558 = vmatprep.subr.bf16.mxu0 %v1229_v17  ;;  %611 = vmatprep.subr.bf16.mxu1 %v1255_v28  ;;  %v912_v63 = vsel %vm911_vm0, %v907_v59, 0.0 }
  0x46   : > { %913 = vadd.xlane.f32.xlu0 %v912_v63  ;;  %919 = vadd.xlane.f32.xlu1 %v918_v0 }
  0x48   : > { %559 = vmatpush1.bf16.msra.mxu0 %v1231_v18  ;;  %612 = vmatpush1.bf16.msra.mxu1 %v1257_v30 }
  0x49   : > { %560 = vmatprep.subr.bf16.mxu0 %v1232_v21  ;;  %613 = vmatprep.subr.bf16.mxu1 %v1258_v31 }
  0x4a   : > { %916 = vadd.xlane.f32.xlu0 %v915_v1  ;;  %922 = vadd.xlane.f32.xlu1 %v921_v2 }
  0x4c   : > { %561 = vmatpush1.bf16.msra.mxu0 %v1234_v22  ;;  %614 = vmatpush1.bf16.msra.mxu1 %v1260_v32 }
  0x4d   : > { %562 = vmatprep.subr.bf16.mxu0 %v1235_v23  ;;  %615 = vmatprep.subr.bf16.mxu1 %v1261_v33 }
  0x50   : > { %563 = vmatpush1.bf16.msra.mxu0 %v1239_v27  ;;  %616 = vmatpush1.bf16.msra.mxu1 %v1263_v35 }
  0x51   : > { %1143 = vmatprep.subr.bf16.mxu0 %v1264_v36  ;;  %1171 = vmatprep.subr.bf16.mxu1 %v1264_v36 }
  0x53   : > { %581 = vmatmul.mubr.bf16.vlgmr.msra.gmra.mxu0 %v1241_v29  ;;  %634 = vmatmul.mubr.bf16.vlgmr.msra.gmra.mxu1 %v1241_v29 }
  0x54   : > { %590 = vmatprep.mubr.bf16.mxu0 %v1352_v3  ;;  %643 = vmatprep.mubr.bf16.mxu1 %v1352_v3 }
  0x55   : > { %1144 = vmatpush3.bf16.msra.mxu0 %v1265_v37  ;;  %1179 = vmatpush3.bf16.msra.mxu1 %v1265_v37 }
  0x56   : > { %1145 = vmatprep.subr.bf16.mxu0 %v1266_v38  ;;  %1172 = vmatprep.subr.bf16.mxu1 %v1266_v38 }
  0x59   : > { %1146 = vmatpush3.bf16.msra.mxu0 %v1267_v39  ;;  %1180 = vmatpush3.bf16.msra.mxu1 %v1267_v39 }
  0x5a   : > { %1147 = vmatprep.subr.bf16.mxu0 %v1268_v40  ;;  %1173 = vmatprep.subr.bf16.mxu1 %v1268_v40 }
  0x5b   : > { %591 = vmatmul.mubr.bf16.gmra.mxu0 %v1248_v34  ;;  %644 = vmatmul.mubr.bf16.gmra.mxu1 %v1248_v34 }
  0x5d   : > { %1148 = vmatpush3.bf16.msra.mxu0 %v1269_v41  ;;  %1181 = vmatpush3.bf16.msra.mxu1 %v1269_v41 }
  0x5e   : > { %1149 = vmatprep.subr.bf16.mxu0 %v1270_v42  ;;  %1174 = vmatprep.subr.bf16.mxu1 %v1270_v42 }
  0x61   : > { %1150 = vmatpush3.bf16.msra.mxu0 %v1271_v43  ;;  %1182 = vmatpush3.bf16.msra.mxu1 %v1271_v43 }
  0x62   : > { %1151 = vmatprep.subr.bf16.mxu0 %v1272_v44  ;;  %1175 = vmatprep.subr.bf16.mxu1 %v1272_v44 }
  0x65   : > { %1152 = vmatpush3.bf16.msra.mxu0 %v1273_v45  ;;  %1183 = vmatpush3.bf16.msra.mxu1 %v1273_v45 }
  0x66   : > { %1153 = vmatprep.subr.bf16.mxu0 %v1274_v46  ;;  %1176 = vmatprep.subr.bf16.mxu1 %v1274_v46 }
  0x69   : > { %1154 = vmatpush3.bf16.msra.mxu0 %v1275_v47  ;;  %1184 = vmatpush3.bf16.msra.mxu1 %v1275_v47 }
  0x6a   : > { %1155 = vmatprep.subr.bf16.mxu0 %v1276_v48  ;;  %1177 = vmatprep.subr.bf16.mxu1 %v1276_v48 }
  0x6d   : > { %1156 = vmatpush3.bf16.msra.mxu0 %v1277_v49  ;;  %1185 = vmatpush3.bf16.msra.mxu1 %v1277_v49 }
  0x6e   : > { %1157 = vmatprep.subr.bf16.mxu0 %v1278_v50  ;;  %1178 = vmatprep.subr.bf16.mxu1 %v1278_v50 }
  0x71   : > { %1158 = vmatpush3.bf16.msra.mxu0 %v1279_v51  ;;  %1186 = vmatpush3.bf16.msra.mxu1 %v1279_v51 }
 0x113   : > { %v582_v3 = vpop.f32.mrf.mxu0  ;;  %v635_v24 = vpop.f32.mrf.mxu1 }
 0x114   : > { %v1112_v4 = vmul.f32 -1.442695, %v582_v3 }
 0x115   : > { %v584_v5 = vpop.f32.mrf.mxu0  ;;  %v637_v29 = vpop.f32.mrf.mxu1 }
 0x116   : > { %1280 = vpow2.f32 %v1112_v4  ;;  %v1113_v6 = vmul.f32 -1.442695, %v584_v5 }
 0x117   : > { %v586_v7 = vpop.f32.mrf.mxu0  ;;  %v639_v34 = vpop.f32.mrf.mxu1 }
 0x118   : > { %1282 = vpow2.f32 %v1113_v6  ;;  %v1114_v8 = vmul.f32 -1.442695, %v586_v7 }
 0x119   : > { %v588_v9 = vpop.f32.mrf.mxu0  ;;  %v641_v38 = vpop.f32.mrf.mxu1 }
 0x11a   : > { %1284 = vpow2.f32 %v1114_v8  ;;  %v1115_v10 = vmul.f32 -1.442695, %v588_v9  ;;  %v914_v8 = vpop.xlane.xlu0 %913 }
 0x11b   : > { %v1504_v11 = vpop.f32.mrf.mxu0  ;;  %v645_v42 = vpop.f32.mrf.mxu1 }
 0x11c   : > { %1286 = vpow2.f32 %v1115_v10  ;;  %v1116_v12 = vmul.f32 -1.442695, %v1504_v11 }
 0x11d   : > { %v594_v13 = vpop.f32.mrf.mxu0  ;;  %v647_v49 = vpop.f32.mrf.mxu1 }
 0x11e   : > { %1288 = vpow2.f32 %v1116_v12  ;;  %v1117_v14 = vmul.f32 -1.442695, %v594_v13  ;;  %v924_v12 = vld [vmem:[%s1546_s5] sm:$0xff] }
 0x11f   : > { %v596_v15 = vpop.f32.mrf.mxu0  ;;  %v649_v58 = vpop.f32.mrf.mxu1 }
 0x120   : > { %1290 = vpow2.f32 %v1117_v14  ;;  %v1118_v16 = vmul.f32 -1.442695, %v596_v15 }
 0x121   : > { %v598_v17 = vpop.f32.mrf.mxu0  ;;  %v651_v1 = vpop.f32.mrf.mxu1 }
 0x122   : > { %1292 = vpow2.f32 %v1118_v16  ;;  %v1119_v18 = vmul.f32 -1.442695, %v598_v17 }
 0x123   : > { %v1281_v19 = vpop.eup %1280 }
 0x124   : > { %1294 = vpow2.f32 %v1119_v18  ;;  %v678_v21 = vadd.f32 1.0, %v1281_v19  ;;  %v925_v18 = vld [vmem:[%s1546_s5 + $0x8] sm:$0xff] }
 0x125   : > { %v1283_v20 = vpop.eup %1282 }
 0x126   : > { %v679_v22 = vadd.f32 1.0, %v1283_v20  ;;  %v920_v20 = vpop.xlane.xlu1 %919 }
 0x127   : > { %v1285_v23 = vpop.eup %1284 }
 0x128   : > { %1296 = vrcp.f32 %v679_v22  ;;  %v680_v25 = vadd.f32 1.0, %v1285_v23 }
 0x129   : > { %v1287_v26 = vpop.eup %1286  ;;  %1298 = vrcp.f32 %v678_v21 }
 0x12a   : > { %1300 = vrcp.f32 %v680_v25  ;;  %v681_v27 = vadd.f32 1.0, %v1287_v26  ;;  %v926_v25 = vld [vmem:[%s1546_s5 + $0x10] sm:$0xff] }
 0x12b   : > { %v1289_v28 = vpop.eup %1288 }
 0x12c   : > { %1302 = vrcp.f32 %v681_v27  ;;  %v682_v31 = vadd.f32 1.0, %v1289_v28 }
 0x12d   : > { %v1291_v30 = vpop.eup %1290 }
 0x12e   : > { %v683_v32 = vadd.f32 1.0, %v1291_v30 }
 0x12f   : > { %v1293_v33 = vpop.eup %1292 }
 0x130   : > { %1304 = vrcp.f32 %v683_v32  ;;  %v684_v35 = vadd.f32 1.0, %v1293_v33  ;;  %v927_v32 = vld [vmem:[%s1546_s5 + $0x18] sm:$0xff] }
 0x131   : > { %v1295_v36 = vpop.eup %1294  ;;  %1306 = vrcp.f32 %v682_v31 }
 0x132   : > { %1308 = vrcp.f32 %v684_v35  ;;  %v685_v37 = vadd.f32 1.0, %v1295_v36 }
 0x134   : > { %1310 = vrcp.f32 %v685_v37 }
 0x135   : > { %v1297_v39 = vpop.eup %1296 }
 0x136   : > { %v1299_v40 = vpop.eup %1298  ;;  %v703_v43 = vmul.f32 %v1297_v39, %v584_v5 }
 0x137   : > { %v1301_v41 = vpop.eup %1300  ;;  %v702_v46 = vmul.f32 %v1299_v40, %v582_v3 }
 0x138   : > { %v704_v44 = vmul.f32 %v1301_v41, %v586_v7  ;;  %v711_v50 = vmul.f32 %v703_v43, %v637_v29  ;;  %v923_v29 = vpop.xlane.xlu1 %922 }
 0x139   : > { %v1303_v45 = vpop.eup %1302  ;;  %v710_v53 = vmul.f32 %v702_v46, %v635_v24 }
 0x13a   : > { %v705_v47 = vmul.f32 %v1303_v45, %v588_v9  ;;  %v712_v48 = vmul.f32 %v704_v44, %v639_v34 }
 0x13c   : > { %v713_v51 = vmul.f32 %v705_v47, %v641_v38  ;;  %v718_v57 = vpack.c.bf16 %v712_v48, %v710_v53 }
 0x13d   : > { %v1305_v52 = vpop.eup %1304 }
 0x13e   : > { %v1307_v54 = vpop.eup %1306  ;;  %v719_v55 = vpack.c.bf16 %v713_v51, %v711_v50  ;;  %v707_v59 = vmul.f32 %v1305_v52, %v594_v13 }
 0x13f   : > { %v1309_v56 = vpop.eup %1308  ;;  %v706_v62 = vmul.f32 %v1307_v54, %v1504_v11 }
 0x140   : > { %v708_v60 = vmul.f32 %v1309_v56, %v596_v15  ;;  %882 = vmatprep.mubr.bf16.mxu0 %v719_v55  ;;  %v715_v2 = vmul.f32 %v707_v59, %v647_v49  ;;  %v917_v15 = vpop.xlane.xlu0 %916 }
 0x141   : > { %v1311_v61 = vpop.eup %1310  ;;  %883 = vmatmul.mubr.bf16.vlgmr.msra.gmra.mxu0 %v718_v57  ;;  %v714_v4 = vmul.f32 %v706_v62, %v645_v42 }
 0x142   : > { %v709_v63 = vmul.f32 %v1311_v61, %v598_v17  ;;  %v716_v0 = vmul.f32 %v708_v60, %v649_v58 }
 0x144   : > { %v717_v3 = vmul.f32 %v709_v63, %v651_v1  ;;  %v720_v6 = vpack.c.bf16 %v716_v0, %v714_v4 }
 0x146   : > { %v721_v5 = vpack.c.bf16 %v717_v3, %v715_v2 }
 0x148   : > { %890 = vmatprep.mubr.bf16.mxu1 %v721_v5 }
 0x149   : > { %891 = vmatmul.mubr.bf16.vlgmr.msra.gmra.mxu1 %v720_v6 }
 0x201   : > { %v1159_v7 = vpop.f32.mrf.mxu0 }
 0x203   : > { %v1160_v9 = vpop.f32.mrf.mxu0 }
 0x204   : > { %v1161_v10 = vadd.f32 %v1160_v9, %v1159_v7 }
 0x205   : > { %v1162_v11 = vpop.f32.mrf.mxu0 }
 0x206   : > { %v928_v13 = vmul.f32 %v1161_v10, %v914_v8 }
 0x207   : > { %v1163_v14 = vpop.f32.mrf.mxu0 }
 0x208   : > { %v932_v16 = vadd.f32 %v928_v13, %v924_v12  ;;  %v1164_v17 = vadd.f32 %v1163_v14, %v1162_v11 }
 0x209   : > { %v1165_v19 = vpop.f32.mrf.mxu1 }
 0x20a   : > { %936 = vst [vmem:[%s1546_s5] sm:$0xff] %v932_v16  ;;  %v929_v21 = vmul.f32 %v1164_v17, %v917_v15 }
 0x20b   : > { %v1166_v22 = vpop.f32.mrf.mxu1 }
 0x20c   : > { %v933_v23 = vadd.f32 %v929_v21, %v925_v18  ;;  %v1167_v24 = vadd.f32 %v1166_v22, %v1165_v19 }
 0x20d   : > { %v1168_v26 = vpop.f32.mrf.mxu1 }
 0x20e   : > { %937 = vst [vmem:[%s1546_s5 + $0x8] sm:$0xff] %v933_v23  ;;  %v930_v27 = vmul.f32 %v1167_v24, %v920_v20 }
 0x20f   : > { %v1169_v28 = vpop.f32.mrf.mxu1 }
 0x210   : > { %v934_v30 = vadd.f32 %v930_v27, %v926_v25  ;;  %v1170_v31 = vadd.f32 %v1169_v28, %v1168_v26 }
 0x212   : > { %938 = vst [vmem:[%s1546_s5 + $0x10] sm:$0xff] %v934_v30  ;;  %v931_v33 = vmul.f32 %v1170_v31, %v923_v29 }
 0x214   : > { %v935_v34 = vadd.f32 %v931_v33, %v927_v32 }
 0x216   : > { %939 = vst [vmem:[%s1546_s5 + $0x18] sm:$0xff] %v935_v34 }
 0x217 PF: > { %s21_s25 = sadd.s32 1, %s1348_s25   ;;  %s1547_s23 = smov %s1344_s24 }
 0x218   : > { %p18_p12 = scmp.ge.s32.totalorder %s21_s25, 10   ;;  %s1548_s24 = smov %s1550_s0 }
 0x21a   :  { %20 = sbr.rel (!%p18_p12) target bundleno = 17 (0x11), region = 83 }

</bundles_post_ra>
